<compile_context>
chip_gen: v5e
topology: v5e:2x2
jax: 0.10.0
libtpu: 0.0.40
codegen_flags: <defaults>
</compile_context>

<pallas_src>
import math
import functools

import jax
import jax.numpy as jnp
from jax.experimental import pallas as pl
from jax.experimental.pallas import tpu as pltpu


# ---------------------------------------------------------------------------
# Fused kernel: one batch element per grid step.
# ---------------------------------------------------------------------------
def _encoder_layer_kernel(x_ref, wqkv_ref, bqkv_ref, wo_ref, vecs_ref,
                          w1_ref, b1_ref, w2_ref,
                          out_ref, attn_ref, *, scale, eps):
    dt = x_ref.dtype
    H = wqkv_ref.shape[1]
    L, D = x_ref.shape[1], x_ref.shape[2]

    x = x_ref[0]                                           # (L, D), native dtype
    xb = jnp.broadcast_to(x, (H, L, D))                    # head-batched view

    # --- Q/K/V projections: head-batched matmuls, f32 accumulation ----------
    def proj(i):
        r = jax.lax.dot_general(
            xb, wqkv_ref[i], (((2,), (1,)), ((0,), (0,))),
            preferred_element_type=jnp.float32)            # (H, L, E)
        return r + bqkv_ref[i].astype(jnp.float32)         # bias (H, 1, E)

    q = proj(0)
    k = proj(1)
    v = proj(2)

    # --- scaled dot-product attention; softmax math in f32 ------------------
    scores = jax.lax.dot_general(
        q.astype(dt), k.astype(dt), (((2,), (2,)), ((0,), (0,))),
        preferred_element_type=jnp.float32) * scale        # (H, L, L)
    # TODO(synk): attn_mask handling skipped (forward is called with attn_mask=None)
    m = jnp.max(scores, axis=-1, keepdims=True)
    ex = jnp.exp(scores - m)
    ssum = jnp.sum(ex, axis=-1, keepdims=True)
    p = ex * pl.reciprocal(ssum, approx=True)              # probs (H, L, L)
    attn_ref[0] = p.astype(attn_ref.dtype)                 # single contiguous store

    ctx = jax.lax.dot_general(
        p.astype(dt), v.astype(dt), (((2,), (1,)), ((0,), (0,))),
        preferred_element_type=jnp.float32)                # (H, L, E)

    # --- output projection: per-head partials summed over heads -------------
    out_h = jax.lax.dot_general(
        ctx.astype(dt), wo_ref[...].astype(dt), (((2,), (1,)), ((0,), (0,))),
        preferred_element_type=jnp.float32)                # (H, L, D)

    bo  = vecs_ref[0:1, :].astype(jnp.float32)             # (1, D) each
    g1  = vecs_ref[1:2, :].astype(jnp.float32)
    be1 = vecs_ref[2:3, :].astype(jnp.float32)
    g2  = vecs_ref[3:4, :].astype(jnp.float32)
    be2 = vecs_ref[4:5, :].astype(jnp.float32)
    b2  = vecs_ref[5:6, :].astype(jnp.float32)

    new_x = jnp.sum(out_h, axis=0) + bo                    # (L, D), f32

    def layernorm(t, g, b):
        mu = jnp.mean(t, axis=-1, keepdims=True)
        var = jnp.mean(jnp.square(t - mu), axis=-1, keepdims=True)
        return (t - mu) * jax.lax.rsqrt(var + eps) * g + b

    # residual + norm1 (dropout == identity in eval mode)
    x1 = layernorm(x.astype(jnp.float32) + new_x, g1, be1)  # (L, D), f32

    # FFN: Conv1d(kernel_size=1) == per-position matmul; ReLU activation
    y = jnp.dot(x1.astype(dt), w1_ref[...],
                preferred_element_type=jnp.float32)
    y = jnp.maximum(y + b1_ref[...].astype(jnp.float32), 0.0)
    y = jnp.dot(y.astype(dt), w2_ref[...],
                preferred_element_type=jnp.float32) + b2

    out = layernorm(x1 + y, g2, be2)                        # residual + norm2
    out_ref[0] = out.astype(out_ref.dtype)


# ---------------------------------------------------------------------------
# Wrapper
# ---------------------------------------------------------------------------
def encoder_layer_forward(x, params, *, n_heads, eps=1e-5,
                          attn_dtype=jnp.float32):
    B, L, D = x.shape
    d_ff = params['w1'].shape[1]
    H = n_heads
    E = D // H

    # One-time weight re-layouts at the JAX level so the kernel runs pure
    # head-batched matmuls (no in-kernel lane slicing / transposes / concat).
    def split_heads_w(w):                  # (D, D) -> (H, D, E)
        return w.reshape(D, H, E).transpose(1, 0, 2)

    w_qkv = jnp.stack([split_heads_w(params['wq']),
                       split_heads_w(params['wk']),
                       split_heads_w(params['wv'])], axis=0)          # (3, H, D, E)
    b_qkv = jnp.stack([params['bq'].reshape(H, E)[:, None, :],
                       params['bk'].reshape(H, E)[:, None, :],
                       params['bv'].reshape(H, E)[:, None, :]], axis=0)  # (3, H, 1, E)
    wo_h = params['wo'].reshape(H, E, D)                              # (H, E, D)
    # Pack all (1, D) vectors into one operand: bo, g1, be1, g2, be2, b2.
    vecs_d = jnp.concatenate([params['bo'], params['g1'], params['be1'],
                              params['g2'], params['be2'], params['b2']],
                             axis=0)                                   # (6, D)

    def full(shape):
        return pl.BlockSpec(shape, lambda b: (0,) * len(shape))

    x_spec = pl.BlockSpec((1, L, D), lambda b: (b, 0, 0))
    attn_spec = pl.BlockSpec((1, H, L, L), lambda b: (b, 0, 0, 0))

    kernel = functools.partial(_encoder_layer_kernel,
                               scale=1.0 / math.sqrt(E), eps=eps)

    out, attn = pl.pallas_call(
        kernel,
        out_shape=(jax.ShapeDtypeStruct((B, L, D), x.dtype),
                   jax.ShapeDtypeStruct((B, H, L, L), attn_dtype)),
        grid=(B,),
        in_specs=[x_spec,
                  full((3, H, D, E)), full((3, H, 1, E)),
                  full((H, E, D)), full((6, D)),
                  full((D, d_ff)), full((1, d_ff)), full((d_ff, D))],
        out_specs=(x_spec, attn_spec),
        compiler_params=pltpu.CompilerParams(
            dimension_semantics=("parallel",),
            # explicit scoped-VMEM budget (64 MiB = v7x physical ceiling,
            # well within v5e/v6e's 128 MiB)
            vmem_limit_bytes=64 * 1024 * 1024),
    )(x, w_qkv, b_qkv, wo_h, vecs_d,
      params['w1'], params['b1'], params['w2'])
    return out, attn


# ---------------------------------------------------------------------------
# Pure-JAX reference (for correctness check)
# ---------------------------------------------------------------------------
def reference_forward(x, p, *, n_heads):
    B, L, D = x.shape
    E = D // n_heads

    def layernorm(v, g, b, eps=1e-5):
        mu = jnp.mean(v, axis=-1, keepdims=True)
        var = jnp.mean((v - mu) ** 2, axis=-1, keepdims=True)
        return (v - mu) / jnp.sqrt(var + eps) * g + b

    q = (x @ p['wq'] + p['bq']).reshape(B, L, n_heads, E)
    k = (x @ p['wk'] + p['bk']).reshape(B, L, n_heads, E)
    v = (x @ p['wv'] + p['bv']).reshape(B, L, n_heads, E)
    scores = jnp.einsum('blhe,bshe->bhls', q, k) / math.sqrt(E)
    A = jax.nn.softmax(scores, axis=-1)
    ctx = jnp.einsum('bhls,bshe->blhe', A, v).reshape(B, L, D)
    new_x = ctx @ p['wo'] + p['bo']
    x1 = layernorm(x + new_x, p['g1'], p['be1'])
    y = jnp.maximum(x1 @ p['w1'] + p['b1'], 0.0) @ p['w2'] + p['b2']
    out = layernorm(x1 + y, p['g2'], p['be2'])
    return out, A


# ---------------------------------------------------------------------------
if __name__ == "__main__":
    B, L, D = 2, 8, 32          # batch, seq length, d_model
    n_heads = 4
    d_ff = 4 * D                # 128

    key = jax.random.PRNGKey(0)
    keys = jax.random.split(key, 13)

    def w(k, shape, scale=0.05):
        return (scale * jax.random.normal(k, shape)).astype(jnp.float32)

    params = {
        'wq': w(keys[0], (D, D)), 'bq': w(keys[1], (1, D)),
        'wk': w(keys[2], (D, D)), 'bk': w(keys[3], (1, D)),
        'wv': w(keys[4], (D, D)), 'bv': w(keys[5], (1, D)),
        'wo': w(keys[6], (D, D)), 'bo': w(keys[7], (1, D)),
        'w1': w(keys[8], (D, d_ff)), 'b1': w(keys[9], (1, d_ff)),   # conv1 (k=1)
        'w2': w(keys[10], (d_ff, D)), 'b2': w(keys[11], (1, D)),    # conv2 (k=1)
        'g1': jnp.ones((1, D), jnp.float32), 'be1': jnp.zeros((1, D), jnp.float32),
        'g2': jnp.ones((1, D), jnp.float32), 'be2': jnp.zeros((1, D), jnp.float32),
    }

    x = jax.random.normal(keys[12], (B, L, D), dtype=jnp.float32)

    out, attn = encoder_layer_forward(x, params, n_heads=n_heads)
    out = jax.block_until_ready(out)
    attn = jax.block_until_ready(attn)

    ref_out, ref_attn = reference_forward(x, params, n_heads=n_heads)
    assert out.shape == (B, L, D) and attn.shape == (B, n_heads, L, L)
    # tolerance slightly relaxed vs exact f32: kernel uses the hardware
    # approximate reciprocal (pl.reciprocal(..., approx=True)) in softmax.
    assert jnp.allclose(out, ref_out, atol=5e-3, rtol=5e-3), \
        float(jnp.max(jnp.abs(out - ref_out)))
    assert jnp.allclose(attn, ref_attn, atol=5e-3, rtol=5e-3), \
        float(jnp.max(jnp.abs(attn - ref_attn)))

    print("KERNEL_OK")
</pallas_src>

<mosaic_0001>
module attributes {stable_mosaic.version = 11 : i64} {
  func.func @_encoder_layer_kernel(%arg0: i32, %arg1: memref<1x8x32xf32, #tpu.memory_space<vmem>>, %arg2: memref<3x4x32x8xf32, #tpu.memory_space<vmem>>, %arg3: memref<3x4x1x8xf32, #tpu.memory_space<vmem>>, %arg4: memref<4x8x32xf32, #tpu.memory_space<vmem>>, %arg5: memref<6x32xf32, #tpu.memory_space<vmem>>, %arg6: memref<32x128xf32, #tpu.memory_space<vmem>>, %arg7: memref<1x128xf32, #tpu.memory_space<vmem>>, %arg8: memref<128x32xf32, #tpu.memory_space<vmem>>, %arg9: memref<1x8x32xf32, #tpu.memory_space<vmem>>, %arg10: memref<1x4x8x8xf32, #tpu.memory_space<vmem>>) attributes {dimension_semantics = [#tpu.dimension_semantics<parallel>], iteration_bounds = array<i64: 2>, scalar_prefetch = 0 : i64, scratch_operands = 0 : i64, tpu.core_type = #tpu.core_type<tc>, window_params = [{transform_indices = @transform_0, window_bounds = array<i64: 1, 8, 32>}, {pipeline_mode = #tpu.pipeline_mode<synchronous>, transform_indices = @transform_1, window_bounds = array<i64: 3, 4, 32, 8>}, {pipeline_mode = #tpu.pipeline_mode<synchronous>, transform_indices = @transform_2, window_bounds = array<i64: 3, 4, 1, 8>}, {pipeline_mode = #tpu.pipeline_mode<synchronous>, transform_indices = @transform_3, window_bounds = array<i64: 4, 8, 32>}, {pipeline_mode = #tpu.pipeline_mode<synchronous>, transform_indices = @transform_4, window_bounds = array<i64: 6, 32>}, {pipeline_mode = #tpu.pipeline_mode<synchronous>, transform_indices = @transform_5, window_bounds = array<i64: 32, 128>}, {pipeline_mode = #tpu.pipeline_mode<synchronous>, transform_indices = @transform_6, window_bounds = array<i64: 1, 128>}, {pipeline_mode = #tpu.pipeline_mode<synchronous>, transform_indices = @transform_7, window_bounds = array<i64: 128, 32>}, {transform_indices = @transform_8, window_bounds = array<i64: 1, 8, 32>}, {transform_indices = @transform_9, window_bounds = array<i64: 1, 4, 8, 8>}]} {
    %c0 = arith.constant 0 : index
    %c0_0 = arith.constant 0 : index
    %c0_1 = arith.constant 0 : index
    %0 = vector.load %arg1[%c0, %c0_0, %c0_1] : memref<1x8x32xf32, #tpu.memory_space<vmem>>, vector<1x8x32xf32>
    %1 = vector.shape_cast %0 : vector<1x8x32xf32> to vector<8x32xf32>
    %2 = vector.shape_cast %1 : vector<8x32xf32> to vector<1x8x32xf32>
    %3 = vector.broadcast %2 : vector<1x8x32xf32> to vector<4x8x32xf32>
    %c0_2 = arith.constant 0 : index
    %c0_3 = arith.constant 0 : index
    %c0_4 = arith.constant 0 : index
    %c0_5 = arith.constant 0 : index
    %4 = vector.load %arg2[%c0_2, %c0_3, %c0_4, %c0_5] : memref<3x4x32x8xf32, #tpu.memory_space<vmem>>, vector<1x4x32x8xf32>
    %5 = vector.shape_cast %4 : vector<1x4x32x8xf32> to vector<4x32x8xf32>
    %cst = arith.constant dense<0.000000e+00> : vector<4x8x8xf32>
    %6 = tpu.matmul %3, %5, %cst {dimension_numbers = #tpu.dot_dimension_numbers<[2], [1], [1], [2], [0, 0, 0, 1, 1, 2], [0], [0]>} : vector<4x8x32xf32>, vector<4x32x8xf32>, vector<4x8x8xf32> -> vector<4x8x8xf32>
    %c0_6 = arith.constant 0 : index
    %c0_7 = arith.constant 0 : index
    %c0_8 = arith.constant 0 : index
    %c0_9 = arith.constant 0 : index
    %7 = vector.load %arg3[%c0_6, %c0_7, %c0_8, %c0_9] : memref<3x4x1x8xf32, #tpu.memory_space<vmem>>, vector<1x4x1x8xf32>
    %8 = vector.shape_cast %7 : vector<1x4x1x8xf32> to vector<4x1x8xf32>
    %9 = vector.broadcast %8 : vector<4x1x8xf32> to vector<4x8x8xf32>
    %10 = arith.addf %6, %9 : vector<4x8x8xf32>
    %c1 = arith.constant 1 : index
    %c0_10 = arith.constant 0 : index
    %c0_11 = arith.constant 0 : index
    %c0_12 = arith.constant 0 : index
    %11 = vector.load %arg2[%c1, %c0_10, %c0_11, %c0_12] : memref<3x4x32x8xf32, #tpu.memory_space<vmem>>, vector<1x4x32x8xf32>
    %12 = vector.shape_cast %11 : vector<1x4x32x8xf32> to vector<4x32x8xf32>
    %cst_13 = arith.constant dense<0.000000e+00> : vector<4x8x8xf32>
    %13 = tpu.matmul %3, %12, %cst_13 {dimension_numbers = #tpu.dot_dimension_numbers<[2], [1], [1], [2], [0, 0, 0, 1, 1, 2], [0], [0]>} : vector<4x8x32xf32>, vector<4x32x8xf32>, vector<4x8x8xf32> -> vector<4x8x8xf32>
    %c1_14 = arith.constant 1 : index
    %c0_15 = arith.constant 0 : index
    %c0_16 = arith.constant 0 : index
    %c0_17 = arith.constant 0 : index
    %14 = vector.load %arg3[%c1_14, %c0_15, %c0_16, %c0_17] : memref<3x4x1x8xf32, #tpu.memory_space<vmem>>, vector<1x4x1x8xf32>
    %15 = vector.shape_cast %14 : vector<1x4x1x8xf32> to vector<4x1x8xf32>
    %16 = vector.broadcast %15 : vector<4x1x8xf32> to vector<4x8x8xf32>
    %17 = arith.addf %13, %16 : vector<4x8x8xf32>
    %c2 = arith.constant 2 : index
    %c0_18 = arith.constant 0 : index
    %c0_19 = arith.constant 0 : index
    %c0_20 = arith.constant 0 : index
    %18 = vector.load %arg2[%c2, %c0_18, %c0_19, %c0_20] : memref<3x4x32x8xf32, #tpu.memory_space<vmem>>, vector<1x4x32x8xf32>
    %19 = vector.shape_cast %18 : vector<1x4x32x8xf32> to vector<4x32x8xf32>
    %cst_21 = arith.constant dense<0.000000e+00> : vector<4x8x8xf32>
    %20 = tpu.matmul %3, %19, %cst_21 {dimension_numbers = #tpu.dot_dimension_numbers<[2], [1], [1], [2], [0, 0, 0, 1, 1, 2], [0], [0]>} : vector<4x8x32xf32>, vector<4x32x8xf32>, vector<4x8x8xf32> -> vector<4x8x8xf32>
    %c2_22 = arith.constant 2 : index
    %c0_23 = arith.constant 0 : index
    %c0_24 = arith.constant 0 : index
    %c0_25 = arith.constant 0 : index
    %21 = vector.load %arg3[%c2_22, %c0_23, %c0_24, %c0_25] : memref<3x4x1x8xf32, #tpu.memory_space<vmem>>, vector<1x4x1x8xf32>
    %22 = vector.shape_cast %21 : vector<1x4x1x8xf32> to vector<4x1x8xf32>
    %23 = vector.broadcast %22 : vector<4x1x8xf32> to vector<4x8x8xf32>
    %24 = arith.addf %20, %23 : vector<4x8x8xf32>
    %cst_26 = arith.constant dense<0.000000e+00> : vector<4x8x8xf32>
    %25 = tpu.matmul %10, %17, %cst_26 {dimension_numbers = #tpu.dot_dimension_numbers<[2], [2], [1], [1], [0, 0, 0, 1, 1, 1], [0], [0]>} : vector<4x8x8xf32>, vector<4x8x8xf32>, vector<4x8x8xf32> -> vector<4x8x8xf32>
    %cst_27 = arith.constant 0.353553385 : f32
    %26 = vector.broadcast %cst_27 : f32 to vector<4x8x8xf32>
    %27 = arith.mulf %25, %26 : vector<4x8x8xf32>
    %cst_28 = arith.constant dense<0xFF800000> : vector<4x8xf32>
    %28 = vector.multi_reduction <maximumf>, %27, %cst_28 [2] : vector<4x8x8xf32> to vector<4x8xf32>
    %29 = vector.shape_cast %28 : vector<4x8xf32> to vector<4x8x1xf32>
    %30 = vector.broadcast %29 : vector<4x8x1xf32> to vector<4x8x8xf32>
    %31 = arith.subf %27, %30 : vector<4x8x8xf32>
    %32 = math.exp %31 : vector<4x8x8xf32>
    %cst_29 = arith.constant dense<0.000000e+00> : vector<4x8xf32>
    %33 = vector.multi_reduction <add>, %32, %cst_29 [2] : vector<4x8x8xf32> to vector<4x8xf32>
    %34 = vector.shape_cast %33 : vector<4x8xf32> to vector<4x8x1xf32>
    %35 = tpu.reciprocal %34 {approx = true} : vector<4x8x1xf32> -> vector<4x8x1xf32>
    %36 = vector.broadcast %35 : vector<4x8x1xf32> to vector<4x8x8xf32>
    %37 = arith.mulf %32, %36 : vector<4x8x8xf32>
    %c0_30 = arith.constant 0 : index
    %c0_31 = arith.constant 0 : index
    %c0_32 = arith.constant 0 : index
    %c0_33 = arith.constant 0 : index
    %38 = vector.load %arg10[%c0_30, %c0_31, %c0_32, %c0_33] : memref<1x4x8x8xf32, #tpu.memory_space<vmem>>, vector<1x4x8x8xf32>
    %39 = vector.shape_cast %38 : vector<1x4x8x8xf32> to vector<4x8x8xf32>
    %40 = vector.shape_cast %37 : vector<4x8x8xf32> to vector<1x4x8x8xf32>
    tpu.vector_store %arg10[%c0_30, %c0_31, %c0_32, %c0_33], %40 {strides = array<i32>} : memref<1x4x8x8xf32, #tpu.memory_space<vmem>>, vector<1x4x8x8xf32>,
    %cst_34 = arith.constant dense<0.000000e+00> : vector<4x8x8xf32>
    %41 = tpu.matmul %37, %24, %cst_34 {dimension_numbers = #tpu.dot_dimension_numbers<[2], [1], [1], [2], [0, 0, 0, 1, 1, 2], [0], [0]>} : vector<4x8x8xf32>, vector<4x8x8xf32>, vector<4x8x8xf32> -> vector<4x8x8xf32>
    %c0_35 = arith.constant 0 : index
    %c0_36 = arith.constant 0 : index
    %c0_37 = arith.constant 0 : index
    %42 = vector.load %arg4[%c0_35, %c0_36, %c0_37] : memref<4x8x32xf32, #tpu.memory_space<vmem>>, vector<4x8x32xf32>
    %cst_38 = arith.constant dense<0.000000e+00> : vector<4x8x32xf32>
    %43 = tpu.matmul %41, %42, %cst_38 {dimension_numbers = #tpu.dot_dimension_numbers<[2], [1], [1], [2], [0, 0, 0, 1, 1, 2], [0], [0]>} : vector<4x8x8xf32>, vector<4x8x32xf32>, vector<4x8x32xf32> -> vector<4x8x32xf32>
    %c0_39 = arith.constant 0 : index
    %c0_40 = arith.constant 0 : index
    %44 = vector.load %arg5[%c0_39, %c0_40] : memref<6x32xf32, #tpu.memory_space<vmem>>, vector<1x32xf32>
    %c1_41 = arith.constant 1 : index
    %c0_42 = arith.constant 0 : index
    %45 = vector.load %arg5[%c1_41, %c0_42] : memref<6x32xf32, #tpu.memory_space<vmem>>, vector<1x32xf32>
    %c2_43 = arith.constant 2 : index
    %c0_44 = arith.constant 0 : index
    %46 = vector.load %arg5[%c2_43, %c0_44] : memref<6x32xf32, #tpu.memory_space<vmem>>, vector<1x32xf32>
    %c3 = arith.constant 3 : index
    %c0_45 = arith.constant 0 : index
    %47 = vector.load %arg5[%c3, %c0_45] : memref<6x32xf32, #tpu.memory_space<vmem>>, vector<1x32xf32>
    %c4 = arith.constant 4 : index
    %c0_46 = arith.constant 0 : index
    %48 = vector.load %arg5[%c4, %c0_46] : memref<6x32xf32, #tpu.memory_space<vmem>>, vector<1x32xf32>
    %c5 = arith.constant 5 : index
    %c0_47 = arith.constant 0 : index
    %49 = vector.load %arg5[%c5, %c0_47] : memref<6x32xf32, #tpu.memory_space<vmem>>, vector<1x32xf32>
    %cst_48 = arith.constant dense<0.000000e+00> : vector<8x32xf32>
    %50 = vector.multi_reduction <add>, %43, %cst_48 [0] : vector<4x8x32xf32> to vector<8x32xf32>
    %51 = vector.broadcast %44 : vector<1x32xf32> to vector<8x32xf32>
    %52 = arith.addf %50, %51 : vector<8x32xf32>
    %53 = arith.addf %1, %52 : vector<8x32xf32>
    %cst_49 = arith.constant dense<0.000000e+00> : vector<8xf32>
    %54 = vector.multi_reduction <add>, %53, %cst_49 [1] : vector<8x32xf32> to vector<8xf32>
    %55 = vector.shape_cast %54 : vector<8xf32> to vector<8x1xf32>
    %cst_50 = arith.constant 3.200000e+01 : f32
    %56 = vector.broadcast %cst_50 : f32 to vector<8x1xf32>
    %57 = arith.divf %55, %56 : vector<8x1xf32>
    %58 = vector.broadcast %57 : vector<8x1xf32> to vector<8x32xf32>
    %59 = arith.subf %53, %58 : vector<8x32xf32>
    %60 = arith.mulf %59, %59 : vector<8x32xf32>
    %cst_51 = arith.constant dense<0.000000e+00> : vector<8xf32>
    %61 = vector.multi_reduction <add>, %60, %cst_51 [1] : vector<8x32xf32> to vector<8xf32>
    %62 = vector.shape_cast %61 : vector<8xf32> to vector<8x1xf32>
    %cst_52 = arith.constant 3.200000e+01 : f32
    %63 = vector.broadcast %cst_52 : f32 to vector<8x1xf32>
    %64 = arith.divf %62, %63 : vector<8x1xf32>
    %65 = vector.broadcast %57 : vector<8x1xf32> to vector<8x32xf32>
    %66 = arith.subf %53, %65 : vector<8x32xf32>
    %cst_53 = arith.constant 9.99999974E-6 : f32
    %67 = vector.broadcast %cst_53 : f32 to vector<8x1xf32>
    %68 = arith.addf %64, %67 : vector<8x1xf32>
    %69 = math.rsqrt %68 : vector<8x1xf32>
    %70 = vector.broadcast %69 : vector<8x1xf32> to vector<8x32xf32>
    %71 = arith.mulf %66, %70 : vector<8x32xf32>
    %72 = vector.broadcast %45 : vector<1x32xf32> to vector<8x32xf32>
    %73 = arith.mulf %71, %72 : vector<8x32xf32>
    %74 = vector.broadcast %46 : vector<1x32xf32> to vector<8x32xf32>
    %75 = arith.addf %73, %74 : vector<8x32xf32>
    %c0_54 = arith.constant 0 : index
    %c0_55 = arith.constant 0 : index
    %76 = vector.load %arg6[%c0_54, %c0_55] : memref<32x128xf32, #tpu.memory_space<vmem>>, vector<32x128xf32>
    %cst_56 = arith.constant dense<0.000000e+00> : vector<8x128xf32>
    %77 = tpu.matmul %75, %76, %cst_56 {dimension_numbers = #tpu.dot_dimension_numbers<[1], [0], [0], [1], [0, 0, 1, 1], [], []>} : vector<8x32xf32>, vector<32x128xf32>, vector<8x128xf32> -> vector<8x128xf32>
    %c0_57 = arith.constant 0 : index
    %c0_58 = arith.constant 0 : index
    %78 = vector.load %arg7[%c0_57, %c0_58] : memref<1x128xf32, #tpu.memory_space<vmem>>, vector<1x128xf32>
    %79 = vector.broadcast %78 : vector<1x128xf32> to vector<8x128xf32>
    %80 = arith.addf %77, %79 : vector<8x128xf32>
    %cst_59 = arith.constant 0.000000e+00 : f32
    %81 = vector.broadcast %cst_59 : f32 to vector<8x128xf32>
    %82 = arith.maximumf %80, %81 : vector<8x128xf32>
    %c0_60 = arith.constant 0 : index
    %c0_61 = arith.constant 0 : index
    %83 = vector.load %arg8[%c0_60, %c0_61] : memref<128x32xf32, #tpu.memory_space<vmem>>, vector<128x32xf32>
    %cst_62 = arith.constant dense<0.000000e+00> : vector<8x32xf32>
    %84 = tpu.matmul %82, %83, %cst_62 {dimension_numbers = #tpu.dot_dimension_numbers<[1], [0], [0], [1], [0, 0, 1, 1], [], []>} : vector<8x128xf32>, vector<128x32xf32>, vector<8x32xf32> -> vector<8x32xf32>
    %85 = vector.broadcast %49 : vector<1x32xf32> to vector<8x32xf32>
    %86 = arith.addf %84, %85 : vector<8x32xf32>
    %87 = arith.addf %75, %86 : vector<8x32xf32>
    %cst_63 = arith.constant dense<0.000000e+00> : vector<8xf32>
    %88 = vector.multi_reduction <add>, %87, %cst_63 [1] : vector<8x32xf32> to vector<8xf32>
    %89 = vector.shape_cast %88 : vector<8xf32> to vector<8x1xf32>
    %cst_64 = arith.constant 3.200000e+01 : f32
    %90 = vector.broadcast %cst_64 : f32 to vector<8x1xf32>
    %91 = arith.divf %89, %90 : vector<8x1xf32>
    %92 = vector.broadcast %91 : vector<8x1xf32> to vector<8x32xf32>
    %93 = arith.subf %87, %92 : vector<8x32xf32>
    %94 = arith.mulf %93, %93 : vector<8x32xf32>
    %cst_65 = arith.constant dense<0.000000e+00> : vector<8xf32>
    %95 = vector.multi_reduction <add>, %94, %cst_65 [1] : vector<8x32xf32> to vector<8xf32>
    %96 = vector.shape_cast %95 : vector<8xf32> to vector<8x1xf32>
    %cst_66 = arith.constant 3.200000e+01 : f32
    %97 = vector.broadcast %cst_66 : f32 to vector<8x1xf32>
    %98 = arith.divf %96, %97 : vector<8x1xf32>
    %99 = vector.broadcast %91 : vector<8x1xf32> to vector<8x32xf32>
    %100 = arith.subf %87, %99 : vector<8x32xf32>
    %cst_67 = arith.constant 9.99999974E-6 : f32
    %101 = vector.broadcast %cst_67 : f32 to vector<8x1xf32>
    %102 = arith.addf %98, %101 : vector<8x1xf32>
    %103 = math.rsqrt %102 : vector<8x1xf32>
    %104 = vector.broadcast %103 : vector<8x1xf32> to vector<8x32xf32>
    %105 = arith.mulf %100, %104 : vector<8x32xf32>
    %106 = vector.broadcast %47 : vector<1x32xf32> to vector<8x32xf32>
    %107 = arith.mulf %105, %106 : vector<8x32xf32>
    %108 = vector.broadcast %48 : vector<1x32xf32> to vector<8x32xf32>
    %109 = arith.addf %107, %108 : vector<8x32xf32>
    %c0_68 = arith.constant 0 : index
    %c0_69 = arith.constant 0 : index
    %c0_70 = arith.constant 0 : index
    %110 = vector.load %arg9[%c0_68, %c0_69, %c0_70] : memref<1x8x32xf32, #tpu.memory_space<vmem>>, vector<1x8x32xf32>
    %111 = vector.shape_cast %110 : vector<1x8x32xf32> to vector<8x32xf32>
    %112 = vector.shape_cast %109 : vector<8x32xf32> to vector<1x8x32xf32>
    tpu.vector_store %arg9[%c0_68, %c0_69, %c0_70], %112 {strides = array<i32>} : memref<1x8x32xf32, #tpu.memory_space<vmem>>, vector<1x8x32xf32>,
    return
  }
  func.func @transform_0(%arg0: i32) -> (i32, i32, i32) {
    %c0_i32 = arith.constant 0 : i32
    %c0_i32_0 = arith.constant 0 : i32
    %c0_i32_1 = arith.constant 0 : i32
    return %arg0, %c0_i32, %c0_i32_0 : i32, i32, i32
  }
  func.func @transform_1(%arg0: i32) -> (i32, i32, i32, i32) {
    %c0_i32 = arith.constant 0 : i32
    %c0_i32_0 = arith.constant 0 : i32
    %c0_i32_1 = arith.constant 0 : i32
    %c0_i32_2 = arith.constant 0 : i32
    %c0_i32_3 = arith.constant 0 : i32
    return %c0_i32, %c0_i32_0, %c0_i32_1, %c0_i32_2 : i32, i32, i32, i32
  }
  func.func @transform_2(%arg0: i32) -> (i32, i32, i32, i32) {
    %c0_i32 = arith.constant 0 : i32
    %c0_i32_0 = arith.constant 0 : i32
    %c0_i32_1 = arith.constant 0 : i32
    %c0_i32_2 = arith.constant 0 : i32
    %c0_i32_3 = arith.constant 0 : i32
    return %c0_i32, %c0_i32_0, %c0_i32_1, %c0_i32_2 : i32, i32, i32, i32
  }
  func.func @transform_3(%arg0: i32) -> (i32, i32, i32) {
    %c0_i32 = arith.constant 0 : i32
    %c0_i32_0 = arith.constant 0 : i32
    %c0_i32_1 = arith.constant 0 : i32
    %c0_i32_2 = arith.constant 0 : i32
    return %c0_i32, %c0_i32_0, %c0_i32_1 : i32, i32, i32
  }
  func.func @transform_4(%arg0: i32) -> (i32, i32) {
    %c0_i32 = arith.constant 0 : i32
    %c0_i32_0 = arith.constant 0 : i32
    %c0_i32_1 = arith.constant 0 : i32
    return %c0_i32, %c0_i32_0 : i32, i32
  }
  func.func @transform_5(%arg0: i32) -> (i32, i32) {
    %c0_i32 = arith.constant 0 : i32
    %c0_i32_0 = arith.constant 0 : i32
    %c0_i32_1 = arith.constant 0 : i32
    return %c0_i32, %c0_i32_0 : i32, i32
  }
  func.func @transform_6(%arg0: i32) -> (i32, i32) {
    %c0_i32 = arith.constant 0 : i32
    %c0_i32_0 = arith.constant 0 : i32
    %c0_i32_1 = arith.constant 0 : i32
    return %c0_i32, %c0_i32_0 : i32, i32
  }
  func.func @transform_7(%arg0: i32) -> (i32, i32) {
    %c0_i32 = arith.constant 0 : i32
    %c0_i32_0 = arith.constant 0 : i32
    %c0_i32_1 = arith.constant 0 : i32
    return %c0_i32, %c0_i32_0 : i32, i32
  }
  func.func @transform_8(%arg0: i32) -> (i32, i32, i32) {
    %c0_i32 = arith.constant 0 : i32
    %c0_i32_0 = arith.constant 0 : i32
    %c0_i32_1 = arith.constant 0 : i32
    return %arg0, %c0_i32, %c0_i32_0 : i32, i32, i32
  }
  func.func @transform_9(%arg0: i32) -> (i32, i32, i32, i32) {
    %c0_i32 = arith.constant 0 : i32
    %c0_i32_0 = arith.constant 0 : i32
    %c0_i32_1 = arith.constant 0 : i32
    %c0_i32_2 = arith.constant 0 : i32
    return %arg0, %c0_i32, %c0_i32_0, %c0_i32_1 : i32, i32, i32, i32
  }
}

</mosaic_0001>

<bundles_post_ra>
// kernel: tpu_custom_call.1
= control target key start
LH: loop header
LB: loop body
LE: loop exit
PB: predicated region body
PF: predicated region fallthrough
CT: control target
= control target key end

     0   :  { %s2082_s0 = inlined_call_operand.vmem [shape: f32[2,8,32], index: 0, kind: input, shape index: {}]   ;;  %s2083_s1 = inlined_call_operand.vmem [shape: f32[3,4,32,8], index: 1, kind: input, shape index: {}]   ;;  %s2084_s2 = inlined_call_operand.vmem [shape: f32[3,4,1,8], index: 2, kind: input, shape index: {}]   ;;  %s2085_s3 = inlined_call_operand.vmem [shape: f32[4,8,32], index: 3, kind: input, shape index: {}]   ;;  %s2086_s4 = inlined_call_operand.vmem [shape: f32[6,32], index: 4, kind: input, shape index: {}]   ;;  %s2087_s5 = inlined_call_operand.vmem [shape: f32[32,128], index: 5, kind: input, shape index: {}]   ;;  %s2088_s6 = inlined_call_operand.vmem [shape: f32[1,128], index: 6, kind: input, shape index: {}]   ;;  %s2089_s7 = inlined_call_operand.vmem [shape: f32[128,32], index: 7, kind: input, shape index: {}]   ;;  %s2090_s8 = inlined_call_operand.hbm [shape: f32[2,8,32], index: 8, kind: output, shape index: {0}]   ;;  %s2091_s9 = inlined_call_operand.hbm [shape: f32[2,4,8,8], index: 9, kind: output, shape index: {1}]  }
   0x1   :  { %2092 = sst [smem:[#allocation8_spill]] %s2082_s0 }
   0x2   :  { %2093 = sst [smem:[#allocation9_spill]] %s2083_s1 }
   0x3   :  { %2094 = sst [smem:[#allocation10_spill]] %s2084_s2 }
   0x4   :  { %2095 = sst [smem:[#allocation11_spill]] %s2085_s3 }
   0x5   :  { %15 = vsyncpa [#allocation3], 0 }
   0x6   :  { %17 = vsyncpa [#allocation3 + $0x1], 0 }
   0x7   :  { %18 = vsyncpa [#allocation5], 0 }
   0x8   :  { %20 = vsyncpa [#allocation5 + $0x1], 0  ;;  %s1626_s30 = smov 0   ;;  %s1628_s10 = smov 0  }
   0x9   :  { %s1630_s11 = smov 0   ;;  %s1632_s12 = smov 0  }
   0xa LB: > { %s1647_s13 = sadd.s32 4294967295, %s1571_s12   ;;  %s1305_s14 = sadd.s32 4294967294, %s1571_s12   ;;  %s1571_s12 = sphi %s1632_s12, %s2105_s12   ;;  %s1567_s11 = sphi %s1630_s11, %s2104_s11   ;;  %s1563_s10 = sphi %s1628_s10, %s2103_s10   ;;  %s1559_s30 = sphi %s1626_s30, %s2102_s30  }
   0xb   : > { %s1651_s15 = sadd.s32 1, %s1571_s12   ;;  %s206_s16 = sadd.s32 1, %s1567_s11 }
   0xc   : > { %s203_s17 = ssub.s32 %s1571_s12, %s1651_s15  ;;  %p216_p0 = scmp.ne.s32.totalorder %s1567_s11, %s1563_s10 }
   0xd   : > { %p204_p1 = scmp.eq.s32.totalorder %s203_s17, 0  ;;  %p217_p2 = scmp.eq.s32.totalorder %s1647_s13, 1 }
   0xe   : > { %p222_p3 = scmp.ne.s32.totalorder %s1563_s10, %s1559_s30  ;;  %p223_p4 = scmp.eq.s32.totalorder %s1305_s14, 1 }
   0xf   : > { %s1662_s18 = scalar_select %p204_p1, %s1567_s11, %s206_s16  }
  0x10   : > { %p1664_p5 = por %p217_p2, %p216_p0  ;;  %p1668_p6 = por %p223_p4, %p222_p3 }
  0x11   : > { %p1308_p7 = scmp.ge.s32.totalorder %s1571_s12, 1  ;;  %p295_p8 = scmp.lt.s32.totalorder %s1571_s12, 3 }
  0x13   : > { %p296_p9 = pnand %p1308_p7, %p295_p8 }
  0x14   : > { %s2098_s1 = sld [smem:[#allocation9_spill]] (!%p296_p9)  ;;  %p335_p10 = scmp.lt.s32.totalorder (!%p296_p9), %s1647_s13, 1 }
  0x15   : > { %299 = sbr.rel (%p296_p9) target bundleno = 1655 (0x677), region = 52  ;;  %s2099_s0 = sld [smem:[#allocation8_spill]] (!%p296_p9) }
  0x16   : > { %s2100_s2 = sld [smem:[#allocation10_spill]] (!%p296_p9)  ;;  %s1902_s27 = sand.u32 (!%p296_p9), 1, %s1563_s10  }
  0x17   : > { %s1310_s28 = sshll.u32 (!%p296_p9), %s1902_s27, 5  ;;  %s2101_s3 = sld [smem:[#allocation11_spill]] (!%p296_p9) }
  0x18   : > { %s1181_s21 = scalar_lea.sflag (!%p296_p9), [#allocation5], %s1902_s27 }
  0x1a   : > { %v343_v0 = vld [vmem:[%s2098_s1 + $0x18] sm:$0xff]  ;;  %v342_v3 = vld [vmem:[%s2098_s1 + $0x10] sm:$0xff]  ;;  %v341_v6 = vld [vmem:[%s2098_s1 + $0x8] sm:$0xff]  ;;  %s336_s25 = scalar_select %p335_p10, %s1647_s13, 1  ;;  %vm372_vm0 = vcmask 261120   ;;  %vm684_vm1 = vcmask 64512  }
  0x1b   : > { %v347_v1 = vld [vmem:[%s2098_s1 + $0x38] sm:$0xff]  ;;  %388 = vmatpush.msra.mxu0 %v343_v0  ;;  %v346_v4 = vld [vmem:[%s2098_s1 + $0x30] sm:$0xff]  ;;  %v345_v7 = vld [vmem:[%s2098_s1 + $0x28] sm:$0xff] }
  0x1c   : > { %v355_v2 = vld [vmem:[%s2098_s1 + $0x78] sm:$0xff]  ;;  %408 = vmatpush.msra.mxu2 %v347_v1  ;;  %v354_v5 = vld [vmem:[%s2098_s1 + $0x70] sm:$0xff]  ;;  %v353_v8 = vld [vmem:[%s2098_s1 + $0x68] sm:$0xff]  ;;  %s1311_s17 = sshll.u32 %s336_s25, 3  ;;  %s1906_s25 = scalar_lea.vmem [#allocation4], %s1310_s28 }
  0x1d   : > { %448 = vmatpush.msra.mxu3 %v355_v2  ;;  %389 = vmatpush.msra.mxu0 %v342_v3  ;;  %v340_v9 = vld [vmem:[%s2098_s1] sm:$0xff]  ;;  %s338_s26 = scalar_lea.vmem %s2099_s0, %s1311_s17  ;;  %v351_v13 = vld [vmem:[%s2098_s1 + $0x58] sm:$0xff]  ;;  %v350_v16 = vld [vmem:[%s2098_s1 + $0x50] sm:$0xff]  ;;  %s1207_s16 = sshll.u32 %s1906_s25, 4  ;;  %s1208_s16 = int_to_ptr.vmem [resolvable:$true] %s1207_s16 }
  0x1e   : > { %409 = vmatpush.msra.mxu2 %v346_v4  ;;  %v344_v10 = vld [vmem:[%s2098_s1 + $0x20] sm:$0xff]  ;;  %v1319_v14 = vld [vmem:[%s2098_s1 + $0x98] sm:$0xff]  ;;  %v1318_v17 = vld [vmem:[%s2098_s1 + $0x90] sm:$0xff] }
  0x1f   : > { %449 = vmatpush.msra.mxu3 %v354_v5  ;;  %390 = vmatpush.msra.mxu0 %v341_v6  ;;  %v352_v11 = vld [vmem:[%s2098_s1 + $0x60] sm:$0xff]  ;;  %v1323_v15 = vld [vmem:[%s2098_s1 + $0xb8] sm:$0xff]  ;;  %v1322_v18 = vld [vmem:[%s2098_s1 + $0xb0] sm:$0xff] }
  0x20   : > { %410 = vmatpush.msra.mxu2 %v345_v7  ;;  %v1715_v12 = vld [vmem:[%s338_s26] sm:$0xff]  ;;  %v349_v19 = vld [vmem:[%s2098_s1 + $0x48] sm:$0xff]  ;;  %v1327_v25 = vld [vmem:[%s2098_s1 + $0xd8] sm:$0xff]  ;;  %s1388_s26 = sshll.u32 %s1647_s13, 5 }
  0x21   : > { %450 = vmatpush.msra.mxu3 %v353_v8  ;;  %391 = vmatpush.msra.mxu0 %v340_v9  ;;  %v1317_v20 = vld [vmem:[%s2098_s1 + $0x88] sm:$0xff]  ;;  %v348_v22 = vld [vmem:[%s2098_s1 + $0x40] sm:$0xff]  ;;  %v1331_v26 = vld [vmem:[%s2098_s1 + $0xf8] sm:$0xff]  ;;  %s1206_s14 = scalar_lea.hbm %s2091_s9, %s1388_s26 }
  0x22   : > { %411 = vmatpush.msra.mxu2 %v344_v10  ;;  %1312 = vmatmul.msk.f32.vlgmr.msra.gmra.mxu0 %vm372_vm0, %v1715_v12  ;;  %v1321_v21 = vld [vmem:[%s2098_s1 + $0xa8] sm:$0xff]  ;;  %v1316_v23 = vld [vmem:[%s2098_s1 + $0x80] sm:$0xff]  ;;  %v1343_v27 = vld [vmem:[%s2098_s1 + $0x118] sm:$0xff]  ;;  %s1209_s17 = sshll.u32 %s1206_s14, 4  ;;  %s1210_s17 = int_to_ptr.hbm [resolvable:$true] %s1209_s17 }
  0x23   : > { %451 = vmatpush.msra.mxu3 %v352_v11  ;;  %1313 = vmatmul.msk.f32.vlgmr.msra.gmra.mxu2 %vm372_vm0, %v1715_v12  ;;  %v1320_v24 = vld [vmem:[%s2098_s1 + $0xa0] sm:$0xff]  ;;  %v1326_v28 = vld [vmem:[%s2098_s1 + $0xd0] sm:$0xff]  ;;  %v1325_v30 = vld [vmem:[%s2098_s1 + $0xc8] sm:$0xff]  ;;  %s1491_s22 = sshra.s32 %s1210_s17, 4  ;;  %s1492_s22 = int_to_ptr.hbm [resolvable:$true] %s1491_s22 }
  0x24   : > { %1315 = vmatmul.msk.f32.vlgmr.msra.gmra.mxu3 %vm372_vm0, %v1715_v12  ;;  %428 = vmatpush.msrb.mxu2 %v351_v13  ;;  %v1330_v29 = vld [vmem:[%s2098_s1 + $0xf0] sm:$0xff]  ;;  %v1329_v31 = vld [vmem:[%s2098_s1 + $0xe8] sm:$0xff]  ;;  %v1324_v32 = vld [vmem:[%s2098_s1 + $0xc0] sm:$0xff]  ;;  %s1493_s23 = scalar_lea.hbm %s1492_s22, 32  ;;  %p1498_p0 = scmp.lt.s32.totalorder %s1492_s22, %s2091_s9 }
  0x25   : > { %502 = vmatpush.msrb.mxu0 %v1319_v14  ;;  %522 = vmatpush.msrb.mxu3 %v1323_v15  ;;  %v1328_v33 = vld [vmem:[%s2098_s1 + $0xe0] sm:$0xff]  ;;  %v1342_v34 = vld [vmem:[%s2098_s1 + $0x110] sm:$0xff]  ;;  %v1341_v35 = vld [vmem:[%s2098_s1 + $0x108] sm:$0xff]  ;;  %p1494_p11 = scmp.ne.s32.totalorder %s1492_s22, %s1493_s23 }
  0x26   : > { %429 = vmatpush.msrb.mxu2 %v350_v16  ;;  %v1347_v36 = vld [vmem:[%s2098_s1 + $0x138] sm:$0xff]  ;;  %v1340_v37 = vld [vmem:[%s2098_s1 + $0x100] sm:$0xff]  ;;  %v1346_v38 = vld [vmem:[%s2098_s1 + $0x130] sm:$0xff] }
  0x27   : > { %503 = vmatpush.msrb.mxu0 %v1318_v17  ;;  %523 = vmatpush.msrb.mxu3 %v1322_v18  ;;  %v1345_v39 = vld [vmem:[%s2098_s1 + $0x128] sm:$0xff]  ;;  %v1344_v40 = vld [vmem:[%s2098_s1 + $0x120] sm:$0xff]  ;;  %v1351_v41 = vld [vmem:[%s2098_s1 + $0x158] sm:$0xff]  ;;  %p1495_p12 = pnand %p1494_p11, %p1664_p5 }
  0x28   : > { %430 = vmatpush.msrb.mxu2 %v349_v19  ;;  %636 = vmatpush.msra.mxu1 %v1347_v36  ;;  %v1355_v42 = vld [vmem:[%s2098_s1 + $0x178] sm:$0xff]  ;;  %v1350_v43 = vld [vmem:[%s2098_s1 + $0x150] sm:$0xff]  ;;  %v1349_v45 = vld [vmem:[%s2098_s1 + $0x148] sm:$0xff] }
  0x29   : > { %504 = vmatpush.msrb.mxu0 %v1317_v20  ;;  %524 = vmatpush.msrb.mxu3 %v1321_v21  ;;  %v1354_v44 = vld [vmem:[%s2098_s1 + $0x170] sm:$0xff]  ;;  %v1353_v46 = vld [vmem:[%s2098_s1 + $0x168] sm:$0xff]  ;;  %v1348_v47 = vld [vmem:[%s2098_s1 + $0x140] sm:$0xff]  ;;  %p1496_p13 = pneg %p1495_p12 }
  0x2a   : > { %431 = vmatpush.msrb.mxu2 %v348_v22  ;;  %637 = vmatpush.msra.mxu1 %v1346_v38  ;;  %v1352_v48 = vld [vmem:[%s2098_s1 + $0x160] sm:$0xff]  ;;  %v1444_v9 = vld [vmem:[%s2100_s2 + $0x8] ss:$0 sm:$0xff]  ;;  %v1445_v13 = vld [vmem:[%s2100_s2 + $0x9] ss:$0 sm:$0xff]  ;;  %s1497_s1 = scalar_lea.hbm %s2091_s9, 64 }
  0x2b   : > { %505 = vmatpush.msrb.mxu0 %v1316_v23  ;;  %525 = vmatpush.msrb.mxu3 %v1320_v24  ;;  %v1439_v52 = vld [vmem:[%s2100_s2 + $0x4] ss:$0 sm:$0xff]  ;;  %v1436_v53 = vld [vmem:[%s2100_s2] ss:$0 sm:$0xff]  ;;  %v1441_v57 = vld [vmem:[%s2100_s2 + $0x5] ss:$0 sm:$0xff]  ;;  %p1499_p1 = scmp.lt.s32.totalorder %s1497_s1, %s1493_s23 }
  0x2c   : > { %1314 = vmatmul.msk.f32.vlgmr.msrb.gmra.mxu2 %vm372_vm0, %v1715_v12  ;;  %1336 = vmatmul.msk.f32.vlgmr.msrb.gmra.mxu0 %vm372_vm0, %v1715_v12  ;;  %v1437_v59 = vld [vmem:[%s2100_s2 + $0x1] ss:$0 sm:$0xff]  ;;  %v1442_v63 = vld [vmem:[%s2100_s2 + $0x6] ss:$0 sm:$0xff]  ;;  %v1443_v0 = vld [vmem:[%s2100_s2 + $0x7] ss:$0 sm:$0xff] }
  0x2d   : > { %1337 = vmatmul.msk.f32.vlgmr.msrb.gmra.mxu3 %vm372_vm0, %v1715_v12  ;;  %542 = vmatpush.msra.mxu2 %v1327_v25  ;;  %v1438_v1 = vld [vmem:[%s2100_s2 + $0x3] ss:$0 sm:$0xff]  ;;  %v1440_v2 = vld [vmem:[%s2100_s2 + $0x2] ss:$0 sm:$0xff]  ;;  %v1446_v16 = vld [vmem:[%s2100_s2 + $0xa] ss:$0 sm:$0xff]  ;;  %p1500_p2 = por %p1499_p1, %p1498_p0 }
  0x2e   : > { %562 = vmatpush.msra.mxu3 %v1331_v26  ;;  %616 = vmatpush.msra.mxu0 %v1343_v27  ;;  %v1447_v17 = vld [vmem:[%s2100_s2 + $0xb] ss:$0 sm:$0xff] }
  0x2f   : > { %543 = vmatpush.msra.mxu2 %v1326_v28  ;;  %638 = vmatpush.msra.mxu1 %v1345_v39  ;;  %p1501_p3 = pnand %p1500_p2, %p1496_p13 }
  0x30   : > { %563 = vmatpush.msra.mxu3 %v1330_v29  ;;  %617 = vmatpush.msra.mxu0 %v1342_v34 }
  0x31   : > { %544 = vmatpush.msra.mxu2 %v1325_v30  ;;  %639 = vmatpush.msra.mxu1 %v1344_v40 }
  0x32   : > { %564 = vmatpush.msra.mxu3 %v1329_v31  ;;  %618 = vmatpush.msra.mxu0 %v1341_v35 }
  0x33   : > { %545 = vmatpush.msra.mxu2 %v1324_v32  ;;  %1361 = vmatmul.msk.f32.vlgmr.msra.gmra.mxu1 %vm372_vm0, %v1715_v12 }
  0x34   : > { %565 = vmatpush.msra.mxu3 %v1328_v33  ;;  %1338 = vmatmul.msk.f32.vlgmr.msra.gmra.mxu2 %vm372_vm0, %v1715_v12 }
  0x35   : > { %1339 = vmatmul.msk.f32.vlgmr.msra.gmra.mxu3 %vm372_vm0, %v1715_v12  ;;  %619 = vmatpush.msra.mxu0 %v1340_v37 }
  0x36   : > { %1360 = vmatmul.msk.f32.vlgmr.msra.gmra.mxu0 %vm372_vm0, %v1715_v12  ;;  %656 = vmatpush.msrb.mxu2 %v1351_v41 }
  0x37   : > { %676 = vmatpush.msrb.mxu3 %v1355_v42 }
  0x38   : > { %657 = vmatpush.msrb.mxu2 %v1350_v43 }
  0x39   : > { %677 = vmatpush.msrb.mxu3 %v1354_v44 }
  0x3a   : > { %658 = vmatpush.msrb.mxu2 %v1349_v45 }
  0x3b   : > { %678 = vmatpush.msrb.mxu3 %v1353_v46 }
  0x3c   : > { %659 = vmatpush.msrb.mxu2 %v1348_v47 }
  0x3d   : > { %679 = vmatpush.msrb.mxu3 %v1352_v48  ;;  %1362 = vmatmul.msk.f32.vlgmr.msrb.gmra.mxu2 %vm372_vm0, %v1715_v12 }
  0x3e   : > { %1363 = vmatmul.msk.f32.vlgmr.msrb.gmra.mxu3 %vm372_vm0, %v1715_v12 }
  0x9f   : > { %v393_v49 = vpop.f32.mrf.mxu0 }
  0xa0   : > { %v394_v56 = vadd.f32 %v1436_v53, %v393_v49 }
  0xa6   : > { %v413_v50 = vpop.f32.mrf.mxu2 }
  0xa7   : > { %v453_v51 = vpop.f32.mrf.mxu3  ;;  %v414_v62 = vadd.f32 %v1437_v59, %v413_v50 }
  0xa8   : > { %v454_v7 = vadd.f32 %v1438_v1, %v453_v51 }
  0xa9   : > { %v507_v54 = vpop.f32.mrf.mxu0 }
  0xaa   : > { %v508_v55 = vadd.f32 %v1439_v52, %v507_v54 }
  0xac   : > { %1364 = vmatpush.xpose.msk.msrb.mxu0 %vm684_vm1, %v508_v55 }
  0xaf   : > { %v433_v58 = vpop.f32.mrf.mxu2  ;;  %1365 = vmatmul.msk.f32.vlgmr.msrb.gmra.mxu0 %vm684_vm1, %v394_v56 }
  0xb0   : > { %v527_v60 = vpop.f32.mrf.mxu3  ;;  %v434_v8 = vadd.f32 %v1440_v2, %v433_v58  ;;  %v641_v14 = vpop.f32.mrf.mxu1  ;;  %v933_v2 = vld [vmem:[%s2101_s3] sm:$0xff] }
  0xb1   : > { %v528_v61 = vadd.f32 %v1441_v57, %v527_v60  ;;  %v642_v15 = vadd.f32 %v1445_v13, %v641_v14 }
  0xb3   : > { %1366 = vmatpush.xpose.msk.msrb.mxu1 %vm684_vm1, %v528_v61  ;;  %v621_v10 = vpop.f32.mrf.mxu0 }
  0xb4   : > { %v622_v11 = vadd.f32 %v1444_v9, %v621_v10 }
  0xb6   : > { %1367 = vmatmul.msk.f32.vlgmr.msrb.gmra.mxu1 %vm684_vm1, %v414_v62  ;;  %859 = vmatpush.msra.mxu0 %v622_v11 }
  0xb7   : > { %v547_v3 = vpop.f32.mrf.mxu2  ;;  %882 = vmatpush.msra.mxu1 %v642_v15 }
  0xb8   : > { %v567_v4 = vpop.f32.mrf.mxu3  ;;  %v548_v5 = vadd.f32 %v1442_v63, %v547_v3  ;;  %955 = vmatpush.msrb.mxu0 %v933_v2  ;;  %v934_v3 = vld [vmem:[%s2101_s3 + $0x8] sm:$0xff]  ;;  %v1450_v2 = vld [vmem:[%s2086_s4 + $0x2] ss:$0 sm:$0xff] }
  0xb9   : > { %v568_v6 = vadd.f32 %v1443_v0, %v567_v4  ;;  %978 = vmatpush.msrb.mxu1 %v934_v3  ;;  %v935_v4 = vld [vmem:[%s2101_s3 + $0x10] sm:$0xff] }
  0xba   : > { %1368 = vmatpush.xpose.msk.msra.mxu2 %vm684_vm1, %v548_v5  ;;  %v936_v5 = vld [vmem:[%s2101_s3 + $0x18] sm:$0xff] }
  0xbb   : > { %1370 = vmatpush.xpose.msk.msra.mxu3 %vm684_vm1, %v568_v6 }
  0xbd   : > { %1369 = vmatmul.msk.f32.vlgmr.msra.gmra.mxu2 %vm684_vm1, %v434_v8 }
  0xbe   : > { %1371 = vmatmul.msk.f32.vlgmr.msra.gmra.mxu3 %vm684_vm1, %v454_v7 }
  0xc0   : > { %v661_v18 = vpop.f32.mrf.mxu2 }
  0xc1   : > { %v681_v19 = vpop.f32.mrf.mxu3  ;;  %v662_v20 = vadd.f32 %v1446_v16, %v661_v18 }
  0xc2   : > { %v682_v21 = vadd.f32 %v1447_v17, %v681_v19 }
  0xc3   : > { %905 = vmatpush.msrb.mxu2 %v662_v20  ;;  %v1448_v20 = vld [vmem:[%s2086_s4] ss:$0 sm:$0xff] }
  0xc4   : > { %928 = vmatpush.msrb.mxu3 %v682_v21 }
  0xc5   : > { %1001 = vmatpush.msra.mxu2 %v935_v4 }
  0xc6   : > { %1024 = vmatpush.msra.mxu3 %v936_v5  ;;  %v1112_v5 = vld [vmem:[%s2089_s7 + $0x10] sm:$0xff] }
 0x12c   : > { %v708_v22 = vpop.f32.mrf.mxu0 }
 0x12d   : > { %v789_v23 = vmul.f32 0.35355338, %v708_v22 }
 0x12f   : > { %v793_v24 = vsel %vm684_vm1, %v789_v23, -inf }
 0x130   : > { %794 = vmax.xlane.f32.xlu1 %v793_v24 }
 0x133   : > { %v734_v25 = vpop.f32.mrf.mxu1 }
 0x134   : > { %v790_v26 = vmul.f32 0.35355338, %v734_v25 }
 0x136   : > { %v796_v27 = vsel %vm684_vm1, %v790_v26, -inf }
 0x138   : > { %797 = vmax.xlane.f32.xlu1 %v796_v27 }
 0x140   : > { %v760_v28 = vpop.f32.mrf.mxu2 }
 0x141   : > { %v791_v29 = vmul.f32 0.35355338, %v760_v28  ;;  %v786_v31 = vpop.f32.mrf.mxu3 }
 0x142   : > { %v792_v32 = vmul.f32 0.35355338, %v786_v31 }
 0x143   : > { %v799_v30 = vsel %vm684_vm1, %v791_v29, -inf }
 0x144   : > { %800 = vmax.xlane.f32.xlu0 %v799_v30  ;;  %v802_v33 = vsel %vm684_vm1, %v792_v32, -inf }
 0x14c   : > { %803 = vmax.xlane.f32.xlu0 %v802_v33 }
 0x1a3   : > { %v795_v34 = vpop.xlane.xlu1 %794 }
 0x1a4   : > { %v805_v35 = vsub.f32 %v789_v23, %v795_v34 }
 0x1a6   : > { %v809_v36 = vmul.f32 1.442695, %v805_v35 }
 0x1a8   : > { %1455 = vpow2.f32 %v809_v36 }
 0x1ab   : > { %v798_v37 = vpop.xlane.xlu1 %797 }
 0x1ac   : > { %v806_v38 = vsub.f32 %v790_v26, %v798_v37  ;;  %v1573_v26 = vmov 32.0   ;;  %v1081_v37 = vld [vmem:[%s2087_s5 + $0x18] sm:$0xff] }
 0x1ae   : > { %v1456_v39 = vpop.eup %1455  ;;  %v811_v40 = vmul.f32 1.442695, %v806_v38  ;;  %v1080_v38 = vld [vmem:[%s2087_s5 + $0x10] sm:$0xff] }
 0x1af   : > { %v817_v41 = vsel %vm684_vm1, %v1456_v39, 0.0 }
 0x1b0   : > { %1457 = vpow2.f32 %v811_v40  ;;  %818 = vadd.xlane.f32.xlu0 %v817_v41  ;;  %v1078_v40 = vld [vmem:[%s2087_s5] sm:$0xff]  ;;  %v1125_v41 = vld [vmem:[%s2089_s7 + $0x78] sm:$0xff] }
 0x1b6   : > { %v1458_v42 = vpop.eup %1457 }
 0x1b7   : > { %v801_v43 = vpop.xlane.xlu0 %800  ;;  %v820_v44 = vsel %vm684_vm1, %v1458_v42, 0.0 }
 0x1b8   : > { %v807_v45 = vsub.f32 %v791_v29, %v801_v43  ;;  %821 = vadd.xlane.f32.xlu1 %v820_v44  ;;  %v1123_v43 = vld [vmem:[%s2089_s7 + $0x68] sm:$0xff] }
 0x1ba   : > { %v813_v46 = vmul.f32 1.442695, %v807_v45 }
 0x1bc   : > { %1459 = vpow2.f32 %v813_v46  ;;  %v1122_v46 = vld [vmem:[%s2089_s7 + $0x60] sm:$0xff] }
 0x1bf   : > { %v804_v47 = vpop.xlane.xlu0 %803 }
 0x1c0   : > { %v808_v48 = vsub.f32 %v792_v32, %v804_v47 }
 0x1c2   : > { %v1460_v49 = vpop.eup %1459  ;;  %v815_v50 = vmul.f32 1.442695, %v808_v48  ;;  %v1121_v48 = vld [vmem:[%s2089_s7 + $0x58] sm:$0xff] }
 0x1c3   : > { %v823_v51 = vsel %vm684_vm1, %v1460_v49, 0.0 }
 0x1c4   : > { %1461 = vpow2.f32 %v815_v50  ;;  %824 = vadd.xlane.f32.xlu2 %v823_v51  ;;  %v1119_v50 = vld [vmem:[%s2089_s7 + $0x48] sm:$0xff]  ;;  %v1118_v51 = vld [vmem:[%s2089_s7 + $0x40] sm:$0xff] }
 0x1ca   : > { %v1462_v52 = vpop.eup %1461 }
 0x1cb   : > { %v826_v53 = vsel %vm684_vm1, %v1462_v52, 0.0 }
 0x1cc   : > { %827 = vadd.xlane.f32.xlu2 %v826_v53  ;;  %v1117_v53 = vld [vmem:[%s2089_s7 + $0x38] sm:$0xff] }
 0x223   : > { %v819_v54 = vpop.xlane.xlu0 %818 }
 0x224   : > { %1463 = vrcp.f32 %v819_v54 }
 0x22a   : > { %v1464_v55 = vpop.eup %1463 }
 0x22b   : > { %v833_v56 = vmul.f32 %v1464_v55, %v1456_v39  ;;  %v822_v57 = vpop.xlane.xlu1 %821  ;;  %v1079_v39 = vld [vmem:[%s2087_s5 + $0x8] sm:$0xff]  ;;  %v1116_v55 = vld [vmem:[%s2089_s7 + $0x30] sm:$0xff] }
 0x22c   : > { %1465 = vrcp.f32 %v822_v57  ;;  %v1115_v57 = vld [vmem:[%s2089_s7 + $0x28] sm:$0xff] }
 0x22d   : > { %1372 = vmatmul.msk.f32.vlgmr.msra.gmra.mxu0 %vm684_vm1, %v833_v56  ;;  %837 = vst.msk [vmem:[%s1906_s25] sm:$0xff] %vm684_vm1, %v833_v56 }
 0x22e   : > { %1101 = vmatpush.msra.mxu0 %v1081_v37 }
 0x230   : > { %1102 = vmatpush.msra.mxu0 %v1080_v38 }
 0x232   : > { %v1466_v58 = vpop.eup %1465  ;;  %1103 = vmatpush.msra.mxu0 %v1079_v39 }
 0x233   : > { %v834_v59 = vmul.f32 %v1466_v58, %v1458_v42  ;;  %v1124_v42 = vld [vmem:[%s2089_s7 + $0x70] sm:$0xff] }
 0x234   : > { %1104 = vmatpush.msra.mxu0 %v1078_v40 }
 0x235   : > { %1373 = vmatmul.msk.f32.vlgmr.msra.gmra.mxu1 %vm684_vm1, %v834_v59  ;;  %838 = vst.msk [vmem:[%s1906_s25 + $0x8] sm:$0xff] %vm684_vm1, %v834_v59  ;;  %v1114_v59 = vld [vmem:[%s2089_s7 + $0x20] sm:$0xff] }
 0x236   : > { %1127 = vmatpush.msra.mxu1 %v1125_v41 }
 0x237   : > { %v825_v60 = vpop.xlane.xlu2 %824 }
 0x238   : > { %1467 = vrcp.f32 %v825_v60  ;;  %1128 = vmatpush.msra.mxu1 %v1124_v42 }
 0x23a   : > { %1129 = vmatpush.msra.mxu1 %v1123_v43 }
 0x23c   : > { %1130 = vmatpush.msra.mxu1 %v1122_v46 }
 0x23e   : > { %v1468_v61 = vpop.eup %1467  ;;  %1131 = vmatpush.msra.mxu1 %v1121_v48 }
 0x23f   : > { %v835_v62 = vmul.f32 %v1468_v61, %v1460_v49  ;;  %v828_v63 = vpop.xlane.xlu2 %827  ;;  %v1120_v49 = vld [vmem:[%s2089_s7 + $0x50] sm:$0xff]  ;;  %v1113_v61 = vld [vmem:[%s2089_s7 + $0x18] sm:$0xff] }
 0x240   : > { %1469 = vrcp.f32 %v828_v63  ;;  %1132 = vmatpush.msra.mxu1 %v1120_v49  ;;  %v1449_v63 = vld [vmem:[%s2086_s4 + $0x1] ss:$0 sm:$0xff] }
 0x241   : > { %1374 = vmatmul.msk.f32.vlgmr.msrb.gmra.mxu2 %vm684_vm1, %v835_v62  ;;  %839 = vst.msk [vmem:[%s1906_s25 + $0x10] sm:$0xff] %vm684_vm1, %v835_v62  ;;  %1471 = vrcp.f32 %v1573_v26 }
 0x242   : > { %1133 = vmatpush.msra.mxu1 %v1119_v50 }
 0x244   : > { %1134 = vmatpush.msra.mxu1 %v1118_v51 }
 0x246   : > { %v1470_v0 = vpop.eup %1469  ;;  %1135 = vmatpush.msra.mxu1 %v1117_v53 }
 0x247   : > { %v836_v1 = vmul.f32 %v1470_v0, %v1462_v52  ;;  %v1472_v27 = vpop.eup %1471 }
 0x248   : > { %v1049_v28 = vmul.f32 32.0, %v1472_v27  ;;  %vm1053_vm2 = vweird.f32 %v1472_v27  ;;  %1136 = vmatpush.msra.mxu1 %v1116_v55 }
 0x249   : > { %1375 = vmatmul.msk.f32.vlgmr.msrb.gmra.mxu3 %vm684_vm1, %v836_v1  ;;  %840 = vst.msk [vmem:[%s1906_s25 + $0x18] sm:$0xff] %vm684_vm1, %v836_v1 }
 0x24a   : > { %v1050_v29 = vsub.f32 1.0, %v1049_v28  ;;  %1137 = vmatpush.msra.mxu1 %v1115_v57 }
 0x24c   : > { %v1051_v30 = vmul.f32 %v1472_v27, %v1050_v29  ;;  %1138 = vmatpush.msra.mxu1 %v1114_v59 }
 0x24e   : > { %v1052_v31 = vadd.f32 %v1472_v27, %v1051_v30  ;;  %1139 = vmatpush.msra.mxu1 %v1113_v61 }
 0x250   : > { %v1944_v32 = vsel %vm1053_vm2, %v1472_v27, %v1052_v31  ;;  %1140 = vmatpush.msra.mxu1 %v1112_v5 }
 0x2aa   : > { %v861_v6 = vpop.f32.mrf.mxu0 }
 0x2ab   : > { %1376 = vmatmul.msk.f32.vlgmr.msrb.gmra.mxu0 %vm684_vm1, %v861_v6  ;;  %v1111_v6 = vld [vmem:[%s2089_s7 + $0x8] sm:$0xff] }
 0x2ac   : > { %1141 = vmatpush.msra.mxu1 %v1111_v6 }
 0x2b2   : > { %v884_v7 = vpop.f32.mrf.mxu1 }
 0x2b3   : > { %1377 = vmatmul.msk.f32.vlgmr.msrb.gmra.mxu1 %vm684_vm1, %v884_v7  ;;  %v1110_v7 = vld [vmem:[%s2089_s7] sm:$0xff] }
 0x2b4   : > { %1142 = vmatpush.msra.mxu1 %v1110_v7 }
 0x2c4   : > { %v907_v8 = vpop.f32.mrf.mxu2 }
 0x2c5   : > { %1378 = vmatmul.msk.f32.vlgmr.msra.gmra.mxu2 %vm684_vm1, %v907_v8  ;;  %v1451_v8 = vld [vmem:[%s2088_s6] ss:$0 sm:$0xff] }
 0x2cc   : > { %v930_v9 = vpop.f32.mrf.mxu3 }
 0x2cd   : > { %1379 = vmatmul.msk.f32.vlgmr.msra.gmra.mxu3 %vm684_vm1, %v930_v9 }
 0x328   : > { %v957_v11 = vpop.f32.mrf.mxu0 }
 0x329   : > { %v1035_v15 = vsel %vm372_vm0, %v957_v11, 0.0 }
 0x330   : > { %v980_v10 = vpop.f32.mrf.mxu1 }
 0x331   : > { %v1036_v14 = vsel %vm372_vm0, %v980_v10, 0.0 }
 0x332   : > { %v1037_v17 = vadd.f32 %v1036_v14, %v1035_v15 }
 0x348   : > { %v1003_v13 = vpop.f32.mrf.mxu2 }
 0x349   : > { %v1038_v16 = vsel %vm372_vm0, %v1003_v13, 0.0  ;;  %v1452_v13 = vld [vmem:[%s2086_s4 + $0x5] ss:$0 sm:$0xff] }
 0x34a   : > { %v1039_v18 = vadd.f32 %v1038_v16, %v1037_v17 }
 0x350   : > { %v1026_v19 = vpop.f32.mrf.mxu3 }
 0x351   : > { %v1040_v21 = vsel %vm372_vm0, %v1026_v19, 0.0 }
 0x352   : > { %v1041_v22 = vadd.f32 %v1040_v21, %v1039_v18 }
 0x354   : > { %v1043_v23 = vadd.f32 %v1448_v20, %v1041_v22 }
 0x356   : > { %v1044_v24 = vadd.f32 %v1043_v23, %v1715_v12 }
 0x358   : > { %v1045_v25 = vsel %vm372_vm0, %v1044_v24, 0.0 }
 0x359   : > { %1046 = vadd.xlane.f32.xlu2 %v1045_v25 }
 0x3cc   : > { %v1047_v33 = vpop.xlane.xlu2 %1046 }
 0x3cd   : > { %v1055_v34 = vmul.f32 %v1944_v32, %v1047_v33 }
 0x3cf   : > { %v1056_v35 = vsub.f32 %v1044_v24, %v1055_v34 }
 0x3d1   : > { %v1057_v36 = vmul.f32 %v1056_v35, %v1056_v35 }
 0x3d3   : > { %v1058_v12 = vsel %vm372_vm0, %v1057_v36, 0.0 }
 0x3d4   : > { %1059 = vadd.xlane.f32.xlu0 %v1058_v12 }
 0x447   : > { %v1060_v44 = vpop.xlane.xlu0 %1059 }
 0x448   : > { %v1061_v45 = vmul.f32 %v1060_v44, %v1944_v32 }
 0x44a   : > { %v1062_v47 = vadd.f32 1e-05, %v1061_v45 }
 0x44c   : > { %1473 = vrsqrt.f32 %v1062_v47  ;;  %vm1069_vm4 = vweird.f32 %v1062_v47 }
 0x452   : > { %v1474_v52 = vpop.eup %1473 }
 0x453   : > { %v1064_v54 = vmul.f32 %v1474_v52, %v1062_v47  ;;  %vm1070_vm3 = vweird.f32 %v1474_v52 }
 0x454   : > { %vm1071_vm5 = vmor %vm1069_vm4, %vm1070_vm3 }
 0x455   : > { %v1065_v56 = vmul.f32 %v1474_v52, %v1064_v54 }
 0x457   : > { %v1066_v58 = vmul.f32 0.5, %v1065_v56 }
 0x459   : > { %v1067_v60 = vsub.f32 1.5, %v1066_v58 }
 0x45b   : > { %v1068_v62 = vmul.f32 %v1474_v52, %v1067_v60 }
 0x45d   : > { %v1072_v0 = vsel %vm1071_vm5, %v1474_v52, %v1068_v62 }
 0x45e   : > { %v1073_v1 = vmul.f32 %v1072_v0, %v1056_v35 }
 0x460   : > { %v1075_v3 = vmul.f32 %v1449_v63, %v1073_v1 }
 0x462   : > { %v1077_v4 = vadd.f32 %v1450_v2, %v1075_v3 }
 0x464   : > { %1380 = vmatmul.msk.f32.vlgmr.msra.gmra.mxu0 %vm372_vm0, %v1077_v4 }
 0x4e1   : > { %v1106_v9 = vpop.f32.mrf.mxu0 }
 0x4e2   : > { %v1107_v10 = vadd.f32 %v1451_v8, %v1106_v9 }
 0x4e4   : > { %v1109_v11 = vmax.f32 %v1107_v10, 0.0 }
 0x4e6   : > { %1143 = vmatmul.f32.vlgmr.msra.gmra.mxu1 %v1109_v11 }
 0x563   : > { %v1144_v14 = vpop.f32.mrf.mxu1 }
 0x564   : > { %v1145_v15 = vadd.f32 %v1452_v13, %v1144_v14 }
 0x566   : > { %v1147_v16 = vadd.f32 %v1145_v15, %v1077_v4 }
 0x568   : > { %v1148_v17 = vsel %vm372_vm0, %v1147_v16, 0.0 }
 0x569   : > { %1149 = vadd.xlane.f32.xlu1 %v1148_v17 }
 0x5dc   : > { %v1150_v18 = vpop.xlane.xlu1 %1149 }
 0x5dd   : > { %v1151_v19 = vmul.f32 %v1150_v18, %v1944_v32 }
 0x5df   : > { %v1152_v20 = vsub.f32 %v1147_v16, %v1151_v19 }
 0x5e1   : > { %v1153_v21 = vmul.f32 %v1152_v20, %v1152_v20 }
 0x5e3   : > { %v1154_v22 = vsel %vm372_vm0, %v1153_v21, 0.0 }
 0x5e4   : > { %1155 = vadd.xlane.f32.xlu2 %v1154_v22 }
 0x5e5   : > { %1504 = shalt.err (!%p1501_p3)
}
 0x5e6   : > { %s1574_s25 = smov 128   ;;  %s1575_s26 = smov 8   ;;  %v1453_v33 = vld [vmem:[%s2086_s4 + $0x3] ss:$0 sm:$0xff]  ;;  %v1454_v35 = vld [vmem:[%s2086_s4 + $0x4] ss:$0 sm:$0xff] }
 0x5e7   : > { %1390 = dma.vmem_to_hbm [thread:$0]  (%p1664_p5), %s1208_s16, 512, %s1210_s17, %s1181_s21, %s1574_s25, %s1574_s25, %s1575_s26  }
 0x5e8   : > { %s1309_s0 = sshll.u32 %s1902_s27, 3  ;;  %s1383_s1 = sshll.u32 %s1647_s13, 3 }
 0x5e9   : > { %s1191_s14 = scalar_lea.hbm %s2090_s8, %s1383_s1  ;;  %s327_s13 = scalar_lea.vmem [#allocation2], %s1309_s0 }
 0x5ea   : > { %s1193_s21 = sshll.u32 %s327_s13, 4  ;;  %s1195_s22 = sshll.u32 %s1191_s14, 4  ;;  %s1194_s21 = int_to_ptr.vmem [resolvable:$true] %s1193_s21  ;;  %s1196_s22 = int_to_ptr.hbm [resolvable:$true] %s1195_s22 }
 0x5eb   : > { %s1176_s23 = scalar_lea.sflag [#allocation3], %s1902_s27  ;;  %s1519_s24 = sshra.s32 %s1196_s22, 4  ;;  %s1520_s24 = int_to_ptr.hbm [resolvable:$true] %s1519_s24 }
 0x5ec   : > { %s1521_s25 = scalar_lea.hbm %s1520_s24, 8  ;;  %s1525_s0 = scalar_lea.hbm %s2090_s8, 16 }
 0x5ed   : > { %p1522_p4 = scmp.ne.s32.totalorder %s1520_s24, %s1521_s25  ;;  %p1526_p9 = scmp.lt.s32.totalorder %s1520_s24, %s2090_s8 }
 0x5ee   : > { %p1527_p10 = scmp.lt.s32.totalorder %s1525_s0, %s1521_s25 }
 0x5ef   : > { %p1523_p7 = pnand %p1522_p4, %p1664_p5 }
 0x5f0   : > { %p1528_p11 = por %p1527_p10, %p1526_p9 }
 0x5f1   : > { %p1524_p8 = pneg %p1523_p7 }
 0x5f3   : > { %p1529_p12 = pnand %p1528_p11, %p1524_p8 }
 0x657   : > { %v1156_v23 = vpop.xlane.xlu2 %1155 }
 0x658   : > { %v1157_v24 = vmul.f32 %v1156_v23, %v1944_v32 }
 0x65a   : > { %v1158_v25 = vadd.f32 1e-05, %v1157_v24 }
 0x65c   : > { %1475 = vrsqrt.f32 %v1158_v25  ;;  %vm1165_vm7 = vweird.f32 %v1158_v25 }
 0x662   : > { %v1476_v26 = vpop.eup %1475 }
 0x663   : > { %v1160_v27 = vmul.f32 %v1476_v26, %v1158_v25  ;;  %vm1166_vm6 = vweird.f32 %v1476_v26 }
 0x664   : > { %vm1167_vm8 = vmor %vm1165_vm7, %vm1166_vm6 }
 0x665   : > { %v1161_v28 = vmul.f32 %v1476_v26, %v1160_v27 }
 0x667   : > { %v1162_v29 = vmul.f32 0.5, %v1161_v28 }
 0x669   : > { %v1163_v30 = vsub.f32 1.5, %v1162_v29 }
 0x66b   : > { %v1164_v31 = vmul.f32 %v1476_v26, %v1163_v30 }
 0x66d   : > { %v1168_v32 = vsel %vm1167_vm8, %v1476_v26, %v1164_v31 }
 0x66e   : > { %v1169_v34 = vmul.f32 %v1168_v32, %v1152_v20 }
 0x670   : > { %v1171_v36 = vmul.f32 %v1453_v33, %v1169_v34 }
 0x672   : > { %v1173_v12 = vadd.f32 %v1454_v35, %v1171_v36 }
 0x674   : > { %1174 = vst.msk [vmem:[%s327_s13] sm:$0xff] %vm372_vm0, %v1173_v12 }
 0x675   : > { %1532 = shalt.err (!%p1529_p12)
}
 0x676   : > { %1389 = dma.vmem_to_hbm [thread:$0]  (%p1664_p5), %s1194_s21, 128, %s1196_s22, %s1176_s23  }
 0x677 PF: > { %p1400_p13 = scmp.ge.s32.totalorder %s1571_s12, 2  ;;  %s1224_s27 = sand.u32 1, %s1559_s30  }
 0x678   : > { %s1225_s28 = scalar_lea.sflag [#allocation3], %s1224_s27 }
 0x679   : > { %p1394_p0 = pnand %p1400_p13, %p1668_p6 }
 0x67b   : > { %p1395_p1 = pneg %p1394_p0 }
 0x67d   : > { %1550 = dma.done.wait (%p1395_p1), %s1225_s28, 128  }
 0x67e   : > { %1552 = vsyncadd (%p1395_p1), %s1225_s28, 4294967168  ;;  %s1235_s29 = scalar_lea.sflag [#allocation5], %s1224_s27 }
 0x67f   : > { %1554 = dma.done.wait (%p1395_p1), %s1235_s29, 512  }
 0x680   : > { %1556 = vsyncadd (%p1395_p1), %s1235_s29, 4294966784  ;;  %p23_p5 = scmp.ge.s32.totalorder %s1651_s15, 4   ;;  %s2102_s30 = smov %s1563_s10 }
 0x681   : > { %s2103_s10 = smov %s1567_s11  ;;  %s2104_s11 = smov %s1662_s18 }
 0x682   : > { %s2105_s12 = smov %s1651_s15  ;;  %25 = sbr.rel (!%p23_p5) target bundleno = 10 (0xa), region = 108 }
 0x687   :  { %1241 = vsyncpa [#allocation3], 1 }
 0x688   :  { %1243 = vsyncpa [#allocation3 + $0x1], 1 }
 0x689   :  { %1244 = vsyncpa [#allocation5], 1 }
 0x68a   :  { %1246 = vsyncpa [#allocation5 + $0x1], 1 }

</bundles_post_ra>
